<compile_context>
chip_gen: v6e
topology: v6e:2x2x1
jax: 0.10.0
libtpu: 0.0.40
codegen_flags: <defaults>
</compile_context>

<pallas_src>
import jax
import jax.numpy as jnp
from jax import lax
from jax.experimental import pallas as pl
from jax.experimental.pallas import tpu as pltpu

EPS = 1e-5
K = 4
STRIDE = 2
PAD = 1


# ---------------------------------------------------------------------------
# Pallas kernels
# ---------------------------------------------------------------------------
def _deconv_phase_kernel(p_ref, w_ref, y_ref, stats_ref):
    """One (Cout, tm) output tile of one parity phase + its partial BN sums."""
    y = jnp.dot(w_ref[...], p_ref[...], preferred_element_type=jnp.float32)
    y_ref[...] = y.astype(y_ref.dtype)                    # lane-dense bf16 store
    s1 = jnp.sum(y, axis=1, keepdims=True)                # (Cout, 1)
    s2 = jnp.sum(y * y, axis=1, keepdims=True)            # (Cout, 1)
    stats_ref[...] = jnp.concatenate([s1, s2], axis=1)    # single (Cout, 2) store


def _bn_relu_kernel(scale_ref, shift_ref, y_ref, o_ref):
    """Elementwise BatchNorm affine + ReLU on a lane-dense (Cout, tm) tile."""
    y = y_ref[...].astype(jnp.float32)
    o_ref[...] = jnp.maximum(y * scale_ref[...] + shift_ref[...], 0.0)


# ---------------------------------------------------------------------------
# JAX glue: 4-phase decomposition of the transposed conv
# ---------------------------------------------------------------------------
def _round_up(a, b):
    return (a + b - 1) // b * b


def _phase_weights(wt):
    """ConvTranspose weight [Cin, Cout, 4, 4] -> (4, Cout, Cin*4) phase slabs."""
    c_in, c_out = wt.shape[0], wt.shape[1]
    slabs = []
    for py in (0, 1):
        for px in (0, 1):
            taps = [wt[:, :, 3 - py - 2 * dy, 3 - px - 2 * dx]
                    for dy in (0, 1) for dx in (0, 1)]               # [Cin, Cout]
            w = jnp.stack(taps, axis=1).reshape(c_in * 4, c_out)     # (Cin*4, Cout)
            slabs.append(w.T)                                        # (Cout, Cin*4)
    return jnp.stack(slabs, axis=0).astype(jnp.float32)


def _phase_patches(x):
    """x NCHW -> per-phase transposed patch matrices (4, Cin*4, N*H*W)."""
    n, c, h, w = x.shape
    xp = jnp.pad(x, ((0, 0), (0, 0), (1, 1), (1, 1)))
    phases = []
    for py in (0, 1):
        for px in (0, 1):
            taps = [xp[:, :, py + dy:py + dy + h, px + dx:px + dx + w]
                    for dy in (0, 1) for dx in (0, 1)]               # [N, C, H, W]
            t = jnp.stack(taps, axis=2)                              # [N, C, 4, H, W]
            phases.append(t.transpose(1, 2, 0, 3, 4).reshape(c * 4, n * h * w))
    return jnp.stack(phases, axis=0).astype(jnp.float32)


def gen_deconv_block(x, wt, bias, gamma, beta, tm_max=2048):
    """Forward pass of GenDeConvBlock. x: NCHW float32. Returns NCHW float32."""
    del bias  # exactly cancelled by training-mode BatchNorm (mean absorbs it)
    n, c_in, h, w = x.shape
    c_out = wt.shape[1]
    kd = c_in * 4                      # contraction dim of each 2x2 phase conv

    mp = n * h * w                     # spatial positions per phase
    tm = min(tm_max, _round_up(mp, 128))
    mp_pad = _round_up(mp, tm)
    num_m = mp_pad // tm

    patches = _phase_patches(x)                            # (4, Kd, Mp)
    if mp_pad != mp:
        patches = jnp.pad(patches, ((0, 0), (0, 0), (0, mp_pad - mp)))
    w_t = _phase_weights(wt)                               # (4, Cout, Kd)

    cp = pltpu.CompilerParams(
        dimension_semantics=("parallel", "parallel"),
        vmem_limit_bytes=32 * 1024 * 1024)

    # Kernel 1: transposed matmul per (phase, M-tile) + per-tile BN partial sums.
    conv_y, part = pl.pallas_call(
        _deconv_phase_kernel,
        out_shape=(jax.ShapeDtypeStruct((4, c_out, mp_pad), jnp.bfloat16),
                   jax.ShapeDtypeStruct((4, num_m, c_out, 2), jnp.float32)),
        grid_spec=pltpu.PrefetchScalarGridSpec(
            num_scalar_prefetch=0, grid=(4, num_m),
            in_specs=[pl.BlockSpec((None, kd, tm), lambda p, i: (p, 0, i)),
                      pl.BlockSpec((None, c_out, kd), lambda p, i: (p, 0, 0))],
            out_specs=(pl.BlockSpec((None, c_out, tm), lambda p, i: (p, 0, i)),
                       pl.BlockSpec((None, None, c_out, 2),
                                    lambda p, i: (p, i, 0, 0)))),
        compiler_params=cp,
    )(patches, w_t)

    # BN finalize (tiny per-channel math) in glue keeps both kernels parallel.
    count = float(n * (2 * h) * (2 * w))
    stats = jnp.sum(part, axis=(0, 1))                     # (Cout, 2)
    mean = stats[:, 0] / count
    var = stats[:, 1] / count - mean * mean                # biased variance
    scale = gamma.astype(jnp.float32) * lax.rsqrt(var + EPS)
    shift = beta.astype(jnp.float32) - mean * scale
    scale_col = scale.reshape(c_out, 1)
    shift_col = shift.reshape(c_out, 1)

    # Kernel 2: elementwise affine + ReLU, lane-dense, fully parallel.
    out = pl.pallas_call(
        _bn_relu_kernel,
        out_shape=jax.ShapeDtypeStruct((4, c_out, mp_pad), jnp.float32),
        grid_spec=pltpu.PrefetchScalarGridSpec(
            num_scalar_prefetch=0, grid=(4, num_m),
            in_specs=[pl.BlockSpec((c_out, 1), lambda p, i: (0, 0)),
                      pl.BlockSpec((c_out, 1), lambda p, i: (0, 0)),
                      pl.BlockSpec((None, c_out, tm), lambda p, i: (p, 0, i))],
            out_specs=pl.BlockSpec((None, c_out, tm), lambda p, i: (p, 0, i))),
        compiler_params=cp,
    )(scale_col, shift_col, conv_y)

    # (4, Cout, Mp) phase-major -> NCHW with output-parity interleave.
    out = out[:, :, :mp].reshape(2, 2, c_out, n, h, w)     # [py, px, co, n, h, w]
    out = out.transpose(3, 2, 4, 0, 5, 1).reshape(n, c_out, 2 * h, 2 * w)
    return out


# ---------------------------------------------------------------------------
# Pure-JAX reference (same math, lax conv, includes the conv bias)
# ---------------------------------------------------------------------------
def _reference(x, wt, bias, gamma, beta):
    w_conv = wt[:, :, ::-1, ::-1].transpose(1, 0, 2, 3)    # OIHW equivalent conv
    p = K - 1 - PAD
    y = lax.conv_general_dilated(
        x, w_conv, window_strides=(1, 1), padding=[(p, p), (p, p)],
        lhs_dilation=(STRIDE, STRIDE),
        dimension_numbers=("NCHW", "OIHW", "NCHW"),
        precision=lax.Precision.HIGHEST)
    y = y + bias[None, :, None, None]
    mean = y.mean(axis=(0, 2, 3), keepdims=True)
    var = ((y - mean) ** 2).mean(axis=(0, 2, 3), keepdims=True)
    yn = (y - mean) * lax.rsqrt(var + EPS)
    yn = yn * gamma[None, :, None, None] + beta[None, :, None, None]
    return jnp.maximum(yn, 0.0)


if __name__ == "__main__":
    key = jax.random.PRNGKey(0)
    k1, k2, k3, k4, k5 = jax.random.split(key, 5)

    N, C_in, H, W = 2, 4, 16, 16
    C_out = 8

    x = jax.random.normal(k1, (N, C_in, H, W), jnp.float32)
    wt = 0.1 * jax.random.normal(k2, (C_in, C_out, K, K), jnp.float32)
    bias = 0.1 * jax.random.normal(k3, (C_out,), jnp.float32)
    gamma = 1.0 + 0.1 * jax.random.normal(k4, (C_out,), jnp.float32)
    beta = 0.1 * jax.random.normal(k5, (C_out,), jnp.float32)

    out = jax.jit(gen_deconv_block)(x, wt, bias, gamma, beta)
    out = jax.block_until_ready(out)

    assert out.shape == (N, C_out, 2 * H, 2 * W), out.shape
    ref = _reference(x, wt, bias, gamma, beta)
    if not jnp.allclose(out, ref, atol=2e-2, rtol=2e-2):
        raise AssertionError("Pallas output does not match reference")

    print("KERNEL_OK")
</pallas_src>

<mosaic_0001>
module attributes {stable_mosaic.version = 11 : i64} {
  func.func @_deconv_phase_kernel(%arg0: i32, %arg1: i32, %arg2: memref<1x16x512xf32, #tpu.memory_space<vmem>>, %arg3: memref<1x8x16xf32, #tpu.memory_space<vmem>>, %arg4: memref<1x8x512xbf16, #tpu.memory_space<vmem>>, %arg5: memref<1x1x8x2xf32, #tpu.memory_space<vmem>>) attributes {dimension_semantics = [#tpu.dimension_semantics<parallel>, #tpu.dimension_semantics<parallel>], iteration_bounds = array<i64: 4, 1>, scalar_prefetch = 0 : i64, scratch_operands = 0 : i64, tpu.core_type = #tpu.core_type<tc>, window_params = [{transform_indices = @transform_0, window_bounds = array<i64: 1, 16, 512>}, {transform_indices = @transform_1, window_bounds = array<i64: 1, 8, 16>}, {transform_indices = @transform_2, window_bounds = array<i64: 1, 8, 512>}, {transform_indices = @transform_3, window_bounds = array<i64: 1, 1, 8, 2>}]} {
    %c0 = arith.constant 0 : index
    %c0_0 = arith.constant 0 : index
    %c0_1 = arith.constant 0 : index
    %0 = vector.load %arg3[%c0, %c0_0, %c0_1] : memref<1x8x16xf32, #tpu.memory_space<vmem>>, vector<1x8x16xf32>
    %1 = vector.shape_cast %0 : vector<1x8x16xf32> to vector<8x16xf32>
    %c0_2 = arith.constant 0 : index
    %c0_3 = arith.constant 0 : index
    %c0_4 = arith.constant 0 : index
    %2 = vector.load %arg2[%c0_2, %c0_3, %c0_4] : memref<1x16x512xf32, #tpu.memory_space<vmem>>, vector<1x16x512xf32>
    %3 = vector.shape_cast %2 : vector<1x16x512xf32> to vector<16x512xf32>
    %cst = arith.constant dense<0.000000e+00> : vector<8x512xf32>
    %4 = tpu.matmul %1, %3, %cst {dimension_numbers = #tpu.dot_dimension_numbers<[1], [0], [0], [1], [0, 0, 1, 1], [], []>} : vector<8x16xf32>, vector<16x512xf32>, vector<8x512xf32> -> vector<8x512xf32>
    %5 = arith.truncf %4 : vector<8x512xf32> to vector<8x512xbf16>
    %c0_5 = arith.constant 0 : index
    %c0_6 = arith.constant 0 : index
    %c0_7 = arith.constant 0 : index
    %6 = vector.load %arg4[%c0_5, %c0_6, %c0_7] : memref<1x8x512xbf16, #tpu.memory_space<vmem>>, vector<1x8x512xbf16>
    %7 = vector.shape_cast %6 : vector<1x8x512xbf16> to vector<8x512xbf16>
    %8 = vector.shape_cast %5 : vector<8x512xbf16> to vector<1x8x512xbf16>
    tpu.vector_store %arg4[%c0_5, %c0_6, %c0_7], %8 {strides = array<i32>} : memref<1x8x512xbf16, #tpu.memory_space<vmem>>, vector<1x8x512xbf16>,
    %cst_8 = arith.constant dense<0.000000e+00> : vector<8xf32>
    %9 = vector.multi_reduction <add>, %4, %cst_8 [1] : vector<8x512xf32> to vector<8xf32>
    %10 = vector.shape_cast %9 : vector<8xf32> to vector<8x1xf32>
    %11 = arith.mulf %4, %4 : vector<8x512xf32>
    %cst_9 = arith.constant dense<0.000000e+00> : vector<8xf32>
    %12 = vector.multi_reduction <add>, %11, %cst_9 [1] : vector<8x512xf32> to vector<8xf32>
    %13 = vector.shape_cast %12 : vector<8xf32> to vector<8x1xf32>
    %14 = tpu.concatenate %10, %13 in 1 : vector<8x1xf32>, vector<8x1xf32> -> vector<8x2xf32>
    %c0_10 = arith.constant 0 : index
    %c0_11 = arith.constant 0 : index
    %c0_12 = arith.constant 0 : index
    %c0_13 = arith.constant 0 : index
    %15 = vector.load %arg5[%c0_10, %c0_11, %c0_12, %c0_13] : memref<1x1x8x2xf32, #tpu.memory_space<vmem>>, vector<1x1x8x2xf32>
    %16 = vector.shape_cast %15 : vector<1x1x8x2xf32> to vector<8x2xf32>
    %17 = vector.shape_cast %14 : vector<8x2xf32> to vector<1x1x8x2xf32>
    tpu.vector_store %arg5[%c0_10, %c0_11, %c0_12, %c0_13], %17 {strides = array<i32>} : memref<1x1x8x2xf32, #tpu.memory_space<vmem>>, vector<1x1x8x2xf32>,
    return
  }
  func.func @transform_0(%arg0: i32, %arg1: i32) -> (i32, i32, i32) {
    %c0_i32 = arith.constant 0 : i32
    %c0_i32_0 = arith.constant 0 : i32
    return %arg0, %c0_i32, %arg1 : i32, i32, i32
  }
  func.func @transform_1(%arg0: i32, %arg1: i32) -> (i32, i32, i32) {
    %c0_i32 = arith.constant 0 : i32
    %c0_i32_0 = arith.constant 0 : i32
    %c0_i32_1 = arith.constant 0 : i32
    return %arg0, %c0_i32, %c0_i32_0 : i32, i32, i32
  }
  func.func @transform_2(%arg0: i32, %arg1: i32) -> (i32, i32, i32) {
    %c0_i32 = arith.constant 0 : i32
    %c0_i32_0 = arith.constant 0 : i32
    return %arg0, %c0_i32, %arg1 : i32, i32, i32
  }
  func.func @transform_3(%arg0: i32, %arg1: i32) -> (i32, i32, i32, i32) {
    %c0_i32 = arith.constant 0 : i32
    %c0_i32_0 = arith.constant 0 : i32
    %c0_i32_1 = arith.constant 0 : i32
    return %arg0, %arg1, %c0_i32, %c0_i32_0 : i32, i32, i32, i32
  }
}

module attributes {stable_mosaic.version = 11 : i64} {
  func.func @_bn_relu_kernel(%arg0: i32, %arg1: i32, %arg2: memref<8x1xf32, #tpu.memory_space<vmem>>, %arg3: memref<8x1xf32, #tpu.memory_space<vmem>>, %arg4: memref<1x8x512xbf16, #tpu.memory_space<vmem>>, %arg5: memref<1x8x512xf32, #tpu.memory_space<vmem>>) attributes {dimension_semantics = [#tpu.dimension_semantics<parallel>, #tpu.dimension_semantics<parallel>], iteration_bounds = array<i64: 4, 1>, scalar_prefetch = 0 : i64, scratch_operands = 0 : i64, tpu.core_type = #tpu.core_type<tc>, window_params = [{pipeline_mode = #tpu.pipeline_mode<synchronous>, transform_indices = @transform_0, window_bounds = array<i64: 8, 1>}, {pipeline_mode = #tpu.pipeline_mode<synchronous>, transform_indices = @transform_1, window_bounds = array<i64: 8, 1>}, {transform_indices = @transform_2, window_bounds = array<i64: 1, 8, 512>}, {transform_indices = @transform_3, window_bounds = array<i64: 1, 8, 512>}]} {
    %c0 = arith.constant 0 : index
    %c0_0 = arith.constant 0 : index
    %c0_1 = arith.constant 0 : index
    %0 = vector.load %arg4[%c0, %c0_0, %c0_1] : memref<1x8x512xbf16, #tpu.memory_space<vmem>>, vector<1x8x512xbf16>
    %1 = vector.shape_cast %0 : vector<1x8x512xbf16> to vector<8x512xbf16>
    %2 = arith.extf %1 : vector<8x512xbf16> to vector<8x512xf32>
    %c0_2 = arith.constant 0 : index
    %c0_3 = arith.constant 0 : index
    %3 = vector.load %arg2[%c0_2, %c0_3] : memref<8x1xf32, #tpu.memory_space<vmem>>, vector<8x1xf32>
    %4 = vector.broadcast %3 : vector<8x1xf32> to vector<8x512xf32>
    %5 = arith.mulf %2, %4 : vector<8x512xf32>
    %c0_4 = arith.constant 0 : index
    %c0_5 = arith.constant 0 : index
    %6 = vector.load %arg3[%c0_4, %c0_5] : memref<8x1xf32, #tpu.memory_space<vmem>>, vector<8x1xf32>
    %7 = vector.broadcast %6 : vector<8x1xf32> to vector<8x512xf32>
    %8 = arith.addf %5, %7 : vector<8x512xf32>
    %cst = arith.constant 0.000000e+00 : f32
    %9 = vector.broadcast %cst : f32 to vector<8x512xf32>
    %10 = arith.maximumf %8, %9 : vector<8x512xf32>
    %c0_6 = arith.constant 0 : index
    %c0_7 = arith.constant 0 : index
    %c0_8 = arith.constant 0 : index
    %11 = vector.load %arg5[%c0_6, %c0_7, %c0_8] : memref<1x8x512xf32, #tpu.memory_space<vmem>>, vector<1x8x512xf32>
    %12 = vector.shape_cast %11 : vector<1x8x512xf32> to vector<8x512xf32>
    %13 = vector.shape_cast %10 : vector<8x512xf32> to vector<1x8x512xf32>
    tpu.vector_store %arg5[%c0_6, %c0_7, %c0_8], %13 {strides = array<i32>} : memref<1x8x512xf32, #tpu.memory_space<vmem>>, vector<1x8x512xf32>,
    return
  }
  func.func @transform_0(%arg0: i32, %arg1: i32) -> (i32, i32) {
    %c0_i32 = arith.constant 0 : i32
    %c0_i32_0 = arith.constant 0 : i32
    %c0_i32_1 = arith.constant 0 : i32
    return %c0_i32, %c0_i32_0 : i32, i32
  }
  func.func @transform_1(%arg0: i32, %arg1: i32) -> (i32, i32) {
    %c0_i32 = arith.constant 0 : i32
    %c0_i32_0 = arith.constant 0 : i32
    %c0_i32_1 = arith.constant 0 : i32
    return %c0_i32, %c0_i32_0 : i32, i32
  }
  func.func @transform_2(%arg0: i32, %arg1: i32) -> (i32, i32, i32) {
    %c0_i32 = arith.constant 0 : i32
    %c0_i32_0 = arith.constant 0 : i32
    return %arg0, %c0_i32, %arg1 : i32, i32, i32
  }
  func.func @transform_3(%arg0: i32, %arg1: i32) -> (i32, i32, i32) {
    %c0_i32 = arith.constant 0 : i32
    %c0_i32_0 = arith.constant 0 : i32
    return %arg0, %c0_i32, %arg1 : i32, i32, i32
  }
}

</mosaic_0001>

<bundles_post_ra>
// kernel: gen_deconv_block.3
= control target key start
LH: loop header
LB: loop body
LE: loop exit
PB: predicated region body
PF: predicated region fallthrough
CT: control target
= control target key end

     0   :  { %s415_s12 = smov 0   ;;  %s417_s13 = smov 0   ;;  %s454_s0 = inlined_call_operand.vmem [shape: f32[8,1], index: 0, kind: input, shape index: {}]   ;;  %s455_s1 = inlined_call_operand.vmem [shape: f32[8,1], index: 1, kind: input, shape index: {}]   ;;  %s456_s2 = inlined_call_operand.vmem [shape: bf16[4,8,512], index: 2, kind: input, shape index: {}]   ;;  %s457_s3 = inlined_call_operand.vmem [shape: f32[4,8,512], index: 3, kind: output, shape index: {}]  }
   0x1   :  { %s419_s14 = smov 0  }
   0x2 LB: > { %s25_s15 = sadd.s32 1, %s388_s13  ;;  %p335_p0 = scmp.ge.s32.totalorder %s392_s14, 1  ;;  %s392_s14 = sphi %s419_s14, %s13_s14   ;;  %s388_s13 = sphi %s417_s13, %s459_s13   ;;  %s384_s12 = sphi %s415_s12, %s458_s12  }
   0x3   : > { %p27_p1 = scmp.ge.s32.totalorder %s25_s15, 4  ;;  %p158_p2 = scmp.lt.s32.totalorder %s392_s14, 5 }
   0x5   : > { %s461_s15 = smov (%p27_p1, %s25_s15), 0  ;;  %p159_p3 = pnand %p335_p0, %p158_p2 }
   0x6   : > { %p191_p4 = scmp.lt.s32.totalorder (!%p159_p3), %s384_s12, 3 }
   0x7   : > { %162 = sbr.rel (%p159_p3) target bundleno = 148 (0x94), region = 32 }
   0xc   : > { %v216_v0 = vld [vmem:[%s454_s0] sm:$0xff]  ;;  %v394_v1 = vmov 0   ;;  %s463_s12 = smov (!%p191_p4, %s384_s12), 3 }
   0xd   : > { %369 = vset.pattern.permute.xlu0 %v394_v1  ;;  %v226_v2 = vld [vmem:[%s455_s1] sm:$0xff]  ;;  %s342_s20 = sshll.u32 %s463_s12, 4  ;;  %s343_s24 = sshll.u32 %s463_s12, 5 }
   0xe   : > { %219 = vperm.xlu0 %369, %v216_v0   ;;  %s198_s23 = scalar_lea.vmem %s456_s2, %s342_s20  ;;  %s208_s27 = scalar_lea.vmem %s457_s3, %s343_s24 }
   0xf   : > { %v210_v3 = vld [vmem:[%s198_s23] sm:$0xff]  ;;  %v211_v4 = vld [vmem:[%s198_s23 + $0x8] sm:$0xff] }
  0x10   : > { %v212_v5 = vunpack.c.l.bf16 %v210_v3  ;;  %v213_v6 = vunpack.c.h.bf16 %v210_v3  ;;  %v214_v7 = vunpack.c.l.bf16 %v211_v4  ;;  %v215_v8 = vunpack.c.h.bf16 %v211_v4 }
  0x12   : > { %229 = vperm.xlu0 %369, %v226_v2  }
  0x89   : > { %v220_v9 = vpop.permute.xlu0 %219 }
  0x8a   : > { %v222_v10 = vmul.f32 %v220_v9, %v212_v5  ;;  %v223_v11 = vmul.f32 %v220_v9, %v213_v6  ;;  %v224_v12 = vmul.f32 %v220_v9, %v214_v7  ;;  %v225_v13 = vmul.f32 %v220_v9, %v215_v8 }
  0x8d   : > { %v230_v14 = vpop.permute.xlu0 %229 }
  0x8e   : > { %v232_v15 = vadd.f32 %v230_v14, %v222_v10  ;;  %v233_v16 = vadd.f32 %v230_v14, %v223_v11  ;;  %v234_v17 = vadd.f32 %v230_v14, %v224_v12  ;;  %v235_v18 = vadd.f32 %v230_v14, %v225_v13 }
  0x90   : > { %v236_v19 = vmax.f32 %v232_v15, 0.0  ;;  %v237_v20 = vmax.f32 %v233_v16, 0.0  ;;  %v238_v21 = vmax.f32 %v234_v17, 0.0  ;;  %v239_v22 = vmax.f32 %v235_v18, 0.0 }
  0x92   : > { %240 = vst [vmem:[%s208_s27] sm:$0xff] %v236_v19  ;;  %241 = vst [vmem:[%s208_s27 + $0x8] sm:$0xff] %v237_v20 }
  0x93   : > { %242 = vst [vmem:[%s208_s27 + $0x10] sm:$0xff] %v238_v21  ;;  %243 = vst [vmem:[%s208_s27 + $0x18] sm:$0xff] %v239_v22 }
  0x94 PF: > { %s13_s14 = sadd.s32 1, %s392_s14   ;;  %s458_s12 = smov %s388_s13 }
  0x95   : > { %p10_p5 = scmp.ge.s32.totalorder %s13_s14, 6   ;;  %s459_s13 = smov %s461_s15 }
  0x97   :  { %12 = sbr.rel (!%p10_p5) target bundleno = 2 (0x2), region = 62 }

// kernel: gen_deconv_block.2
= control target key start
LH: loop header
LB: loop body
LE: loop exit
PB: predicated region body
PF: predicated region fallthrough
CT: control target
= control target key end

     0   :  { %s668_s12 = smov 0   ;;  %s670_s13 = smov 0   ;;  %s716_s0 = inlined_call_operand.vmem [shape: f32[4,16,512], index: 0, kind: input, shape index: {}]   ;;  %s717_s1 = inlined_call_operand.vmem [shape: f32[4,8,16], index: 1, kind: input, shape index: {}]   ;;  %s718_s2 = inlined_call_operand.vmem [shape: bf16[4,8,512], index: 2, kind: output, shape index: {0}]   ;;  %s719_s3 = inlined_call_operand.vmem [shape: f32[4,1,8,2], index: 3, kind: output, shape index: {1}]  }
   0x1   :  { %s672_s14 = smov 0  }
   0x2 LB: > { %s26_s15 = sadd.s32 1, %s641_s13  ;;  %p581_p0 = scmp.ge.s32.totalorder %s645_s14, 1  ;;  %s645_s14 = sphi %s672_s14, %s14_s14   ;;  %s641_s13 = sphi %s670_s13, %s721_s13   ;;  %s637_s12 = sphi %s668_s12, %s720_s12  }
   0x3   : > { %p28_p1 = scmp.ge.s32.totalorder %s26_s15, 4  ;;  %p172_p2 = scmp.lt.s32.totalorder %s645_s14, 5 }
   0x5   : > { %s723_s15 = smov (%p28_p1, %s26_s15), 0  ;;  %p173_p3 = pnand %p581_p0, %p172_p2 }
   0x6   : > { %p216_p4 = scmp.lt.s32.totalorder (!%p173_p3), %s637_s12, 3 }
   0x7   : > { %176 = sbr.rel (%p173_p3) target bundleno = 365 (0x16d), region = 28 }
   0xc   : > { %v647_v0 = vmov 0.0   ;;  %s725_s12 = smov (!%p216_p4, %s637_s12), 3  ;;  %vm255_vm0 = vcmask 130048   ;;  %vm433_vm1 = vcmask 7168   ;;  %vm435_vm2 = vcmask 15360  }
   0xd   : > { %323 = vmatprep.mubr.f32.mxu0 %v647_v0  ;;  %394 = vmatprep.mubr.f32.mxu1 %v647_v0  ;;  %s594_s16 = sshll.u32 %s725_s12, 6  ;;  %s584_s17 = sshll.u32 %s725_s12, 3 }
   0xe   : > { %s223_s20 = scalar_lea.vmem %s716_s0, %s594_s16  ;;  %s228_s23 = scalar_lea.vmem %s717_s1, %s584_s17 }
   0xf   : > { %v252_v1 = vld [vmem:[%s223_s20 + $0x28] sm:$0xff]  ;;  %v251_v2 = vld [vmem:[%s223_s20 + $0x20] sm:$0xff]  ;;  %v254_v4 = vld [vmem:[%s223_s20 + $0x38] sm:$0xff]  ;;  %s595_s24 = sshll.u32 %s725_s12, 4  ;;  %s245_s30 = scalar_lea.vmem %s719_s3, %s584_s17 }
  0x10   : > { %v248_v3 = vld [vmem:[%s223_s20 + $0x8] sm:$0xff]  ;;  %287 = vmatprep.subr.mxu0 %v252_v1  ;;  %v247_v5 = vld [vmem:[%s223_s20] sm:$0xff]  ;;  %v253_v6 = vld [vmem:[%s223_s20 + $0x30] sm:$0xff]  ;;  %358 = vmatprep.subr.mxu1 %v254_v4  ;;  %s237_s27 = scalar_lea.vmem %s718_s2, %s595_s24 }
  0x11   : > { %288 = vmatpush1.msra.mxu0 %v251_v2  ;;  %v246_v7 = vld [vmem:[%s228_s23] sm:$0xff]  ;;  %v250_v8 = vld [vmem:[%s223_s20 + $0x18] sm:$0xff]  ;;  %v249_v9 = vld [vmem:[%s223_s20 + $0x10] sm:$0xff]  ;;  %359 = vmatpush1.msra.mxu1 %v253_v6 }
  0x12   : > { %289 = vmatprep.subr.mxu0 %v248_v3  ;;  %360 = vmatprep.subr.mxu1 %v250_v8 }
  0x13   : > { %290 = vmatpush1.msra.mxu0 %v247_v5  ;;  %361 = vmatpush1.msra.mxu1 %v249_v9 }
  0x14   : > { %588 = vmatmul.mubr.msk.f32.vlgmr.msra.gmra.mxu0 %vm255_vm0, %v246_v7  ;;  %589 = vmatmul.mubr.msk.f32.vlgmr.msra.gmra.mxu1 %vm255_vm0, %v246_v7 }
  0xd4   : > { %v325_v10 = vpop.f32.mrf.mxu0  ;;  %v396_v11 = vpop.f32.mrf.mxu1 }
  0xd5   : > { %v424_v12 = vmul.f32 %v325_v10, %v325_v10  ;;  %v426_v17 = vmul.f32 %v396_v11, %v396_v11 }
  0xd6   : > { %v327_v13 = vpop.f32.mrf.mxu0  ;;  %v398_v18 = vpop.f32.mrf.mxu1 }
  0xd7   : > { %v596_v14 = vpack.c.bf16 %v327_v13, %v325_v10  ;;  %v419_v15 = vadd.f32 %v327_v13, %v325_v10  ;;  %v425_v16 = vmul.f32 %v327_v13, %v327_v13  ;;  %v597_v19 = vpack.c.bf16 %v398_v18, %v396_v11 }
  0xd8   : > { %v427_v24 = vmul.f32 %v398_v18, %v398_v18 }
  0xd9   : > { %417 = vst [vmem:[%s237_s27] sm:$0xff] %v596_v14  ;;  %v428_v20 = vadd.f32 %v425_v16, %v424_v12  ;;  %v420_v21 = vadd.f32 %v419_v15, %v396_v11  ;;  %418 = vst [vmem:[%s237_s27 + $0x8] sm:$0xff] %v597_v19 }
  0xdb   : > { %v421_v22 = vadd.f32 %v420_v21, %v398_v18  ;;  %v429_v23 = vadd.f32 %v428_v20, %v426_v17 }
  0xdd   : > { %422 = vadd.xlane.f32.xlu0 %v421_v22  ;;  %v430_v25 = vadd.f32 %v429_v23, %v427_v24 }
  0xe1   : > { %431 = vadd.xlane.f32.xlu0 %v430_v25 }
 0x166   : > { %v423_v26 = vpop.xlane.xlu0 %422 }
 0x16a   : > { %v432_v27 = vpop.xlane.xlu0 %431 }
 0x16b   : > { %v434_v28 = vsel %vm433_vm1, %v423_v26, %v432_v27 }
 0x16c   : > { %436 = vst.msk [vmem:[%s245_s30] sm:$0xff] %vm435_vm2, %v434_v28 }
 0x16d PF: > { %s14_s14 = sadd.s32 1, %s645_s14   ;;  %s720_s12 = smov %s641_s13 }
 0x16e   : > { %p11_p5 = scmp.ge.s32.totalorder %s14_s14, 6   ;;  %s721_s13 = smov %s723_s15 }
 0x170   :  { %13 = sbr.rel (!%p11_p5) target bundleno = 2 (0x2), region = 73 }

</bundles_post_ra>
